<compile_context>
chip_gen: v6e
topology: v6e:2x2x1
jax: 0.10.0
libtpu: 0.0.40
codegen_flags: <defaults>
</compile_context>

<pallas_src>
import jax
import jax.numpy as jnp
import numpy as np
from jax.experimental import pallas as pl
from jax.experimental.pallas import tpu as pltpu

K = 3                      # conv kernel size
EPS = 1e-5                 # BatchNorm eps
MXU_DTYPE = jnp.bfloat16   # MXU operand dtype (f32 accumulation)


# ----------------------------- Pallas kernels -----------------------------

def _conv_bn_relu_kernel(p_ref, w_ref, s_ref, b_ref, o_ref):
    # p_ref: (1, Kc, M)  im2col patches (channels-first, M = H*W on lanes)
    # w_ref: (Cout, Kc)  flattened conv weight (tap-major, matches patches)
    # s_ref/b_ref: (Cout, 1) folded BatchNorm scale / shift
    # o_ref: (1, Cout, M) == NCHW with H*W flattened (lane-dense store)
    acc = jnp.dot(w_ref[...].astype(MXU_DTYPE),
                  p_ref[0].astype(MXU_DTYPE),
                  preferred_element_type=jnp.float32)
    acc = acc * s_ref[...] + b_ref[...]
    o_ref[0] = jnp.maximum(acc, 0.0)


def _conv_bn_add_relu_kernel(p_ref, w_ref, s_ref, b_ref, id_ref, o_ref):
    # Same as above, plus fused residual add (identity in (1, Cout, M) layout).
    acc = jnp.dot(w_ref[...].astype(MXU_DTYPE),
                  p_ref[0].astype(MXU_DTYPE),
                  preferred_element_type=jnp.float32)
    acc = acc * s_ref[...] + b_ref[...] + id_ref[0]
    o_ref[0] = jnp.maximum(acc, 0.0)


# ----------------------------- wrappers -----------------------------

def _im2col_nchw(x, stride=1):
    """x: (B,C,H,W) -> (B, K*K*C, Ho*Wo), tap-major channel ordering (zero pad=1)."""
    B, C, H, W = x.shape
    xp = jnp.pad(x, ((0, 0), (0, 0), (1, 1), (1, 1)))
    Ho = (H + 2 - K) // stride + 1
    Wo = (W + 2 - K) // stride + 1
    taps = [xp[:, :,
               kh:kh + stride * (Ho - 1) + 1:stride,
               kw:kw + stride * (Wo - 1) + 1:stride]
            for kh in range(K) for kw in range(K)]            # each (B,C,Ho,Wo)
    patches = jnp.stack(taps, axis=1)                          # (B, 9, C, Ho, Wo)
    return patches.reshape(B, K * K * C, Ho * Wo), Ho, Wo


def conv_bn_relu(x_nchw, w, bn_scale, bn_shift, *, stride=1, identity=None):
    """Conv2d(k=3, pad=1, bias=False) + folded BN + [residual add] + ReLU."""
    B, Cin, H, W = x_nchw.shape
    Cout = w.shape[0]
    patches, Ho, Wo = _im2col_nchw(x_nchw, stride)
    Kc = K * K * Cin
    M = Ho * Wo
    # (Cout, Cin, kh, kw) -> (Cout, kh, kw, Cin) -> (Cout, K*K*Cin): tap-major,
    # matching the im2col channel ordering.
    w2d = jnp.transpose(w, (0, 2, 3, 1)).reshape(Cout, Kc)
    s2d = bn_scale.reshape(Cout, 1).astype(jnp.float32)
    b2d = bn_shift.reshape(Cout, 1).astype(jnp.float32)

    in_specs = [
        pl.BlockSpec((1, Kc, M), lambda i: (i, 0, 0)),
        pl.BlockSpec((Cout, Kc), lambda i: (0, 0)),
        pl.BlockSpec((Cout, 1), lambda i: (0, 0)),
        pl.BlockSpec((Cout, 1), lambda i: (0, 0)),
    ]
    args = [patches, w2d, s2d, b2d]
    if identity is None:
        kernel = _conv_bn_relu_kernel
    else:
        kernel = _conv_bn_add_relu_kernel
        ident = identity.reshape(B, Cout, M)   # NCHW flatten: free, row-major
        in_specs.append(pl.BlockSpec((1, Cout, M), lambda i: (i, 0, 0)))
        args.append(ident)

    out = pl.pallas_call(
        kernel,
        out_shape=jax.ShapeDtypeStruct((B, Cout, M), jnp.float32),
        grid=(B,),
        in_specs=in_specs,
        out_specs=pl.BlockSpec((1, Cout, M), lambda i: (i, 0, 0)),
        compiler_params=pltpu.CompilerParams(dimension_semantics=("parallel",)),
    )(*args)
    return out.reshape(B, Cout, Ho, Wo)


def fold_bn(gamma, beta, mean, var):
    """Inference-mode BatchNorm folded to per-channel scale/shift."""
    scale = gamma / jnp.sqrt(var + EPS)
    return scale, beta - mean * scale


def resnet_block_forward(x, p):
    """x: (B, C, H, W) NCHW, exactly like the PyTorch module."""
    s1, b1 = fold_bn(p['bn1_gamma'], p['bn1_beta'], p['bn1_mean'], p['bn1_var'])
    s2, b2 = fold_bn(p['bn2_gamma'], p['bn2_beta'], p['bn2_mean'], p['bn2_var'])
    # TODO(synk): the optional `downsample` submodule (and stride>1 identity) is
    # not implemented; this covers the default downsample=None, stride=1 path
    # (requires in_channel == out_channel, as in the PyTorch module).
    h = conv_bn_relu(x, p['conv1_w'], s1, b1, stride=1)                 # conv1+bn1+relu
    out = conv_bn_relu(h, p['conv2_w'], s2, b2, stride=1, identity=x)   # conv2+bn2+add+relu
    return out


# ----------------------------- params / reference -----------------------------

def init_params(key, in_channel, out_channel):
    ks = jax.random.split(key, 10)
    nrm = lambda k, shape, s: jax.random.normal(k, shape, dtype=jnp.float32) * s
    return {
        'conv1_w':  nrm(ks[0], (out_channel, in_channel, K, K), 0.1),
        'conv2_w':  nrm(ks[1], (out_channel, out_channel, K, K), 0.1),
        'bn1_gamma': 1.0 + nrm(ks[2], (out_channel,), 0.1),
        'bn1_beta':  nrm(ks[3], (out_channel,), 0.1),
        'bn1_mean':  nrm(ks[4], (out_channel,), 0.1),
        'bn1_var':   1.0 + jnp.abs(nrm(ks[5], (out_channel,), 0.1)),
        'bn2_gamma': 1.0 + nrm(ks[6], (out_channel,), 0.1),
        'bn2_beta':  nrm(ks[7], (out_channel,), 0.1),
        'bn2_mean':  nrm(ks[8], (out_channel,), 0.1),
        'bn2_var':   1.0 + jnp.abs(nrm(ks[9], (out_channel,), 0.1)),
    }


def reference_forward(x, p):
    """Pure-JAX NCHW reference mirroring the PyTorch forward (eval-mode BN)."""
    s1, b1 = fold_bn(p['bn1_gamma'], p['bn1_beta'], p['bn1_mean'], p['bn1_var'])
    s2, b2 = fold_bn(p['bn2_gamma'], p['bn2_beta'], p['bn2_mean'], p['bn2_var'])

    def conv(xn, w):
        return jax.lax.conv_general_dilated(
            xn, w, (1, 1), ((1, 1), (1, 1)),
            dimension_numbers=('NCHW', 'OIHW', 'NCHW'))

    h = conv(x, p['conv1_w']) * s1[None, :, None, None] + b1[None, :, None, None]
    h = jnp.maximum(h, 0.0)
    o = conv(h, p['conv2_w']) * s2[None, :, None, None] + b2[None, :, None, None] + x
    return jnp.maximum(o, 0.0)


if __name__ == "__main__":
    B, C, H, W = 2, 16, 16, 16          # in_channel == out_channel, stride=1
    key = jax.random.PRNGKey(0)
    kx, kp = jax.random.split(key)
    x = jax.random.normal(kx, (B, C, H, W), dtype=jnp.float32)
    params = init_params(kp, C, C)

    out = jax.jit(resnet_block_forward)(x, params)
    jax.block_until_ready(out)
    assert out.shape == (B, C, H, W)

    ref = reference_forward(x, params)
    np.testing.assert_allclose(np.asarray(out), np.asarray(ref),
                               rtol=2e-2, atol=2e-2)
    print("KERNEL_OK")
</pallas_src>

<mosaic_0001>
module attributes {stable_mosaic.version = 11 : i64} {
  func.func @_conv_bn_relu_kernel(%arg0: i32, %arg1: memref<1x144x256xf32, #tpu.memory_space<vmem>>, %arg2: memref<16x144xf32, #tpu.memory_space<vmem>>, %arg3: memref<16x1xf32, #tpu.memory_space<vmem>>, %arg4: memref<16x1xf32, #tpu.memory_space<vmem>>, %arg5: memref<1x16x256xf32, #tpu.memory_space<vmem>>) attributes {dimension_semantics = [#tpu.dimension_semantics<parallel>], iteration_bounds = array<i64: 2>, scalar_prefetch = 0 : i64, scratch_operands = 0 : i64, tpu.core_type = #tpu.core_type<tc>, window_params = [{transform_indices = @transform_0, window_bounds = array<i64: 1, 144, 256>}, {pipeline_mode = #tpu.pipeline_mode<synchronous>, transform_indices = @transform_1, window_bounds = array<i64: 16, 144>}, {pipeline_mode = #tpu.pipeline_mode<synchronous>, transform_indices = @transform_2, window_bounds = array<i64: 16, 1>}, {pipeline_mode = #tpu.pipeline_mode<synchronous>, transform_indices = @transform_3, window_bounds = array<i64: 16, 1>}, {transform_indices = @transform_4, window_bounds = array<i64: 1, 16, 256>}]} {
    %c0 = arith.constant 0 : index
    %c0_0 = arith.constant 0 : index
    %0 = vector.load %arg2[%c0, %c0_0] : memref<16x144xf32, #tpu.memory_space<vmem>>, vector<16x144xf32>
    %1 = arith.truncf %0 : vector<16x144xf32> to vector<16x144xbf16>
    %c0_1 = arith.constant 0 : index
    %c0_2 = arith.constant 0 : index
    %c0_3 = arith.constant 0 : index
    %2 = vector.load %arg1[%c0_1, %c0_2, %c0_3] : memref<1x144x256xf32, #tpu.memory_space<vmem>>, vector<1x144x256xf32>
    %3 = vector.shape_cast %2 : vector<1x144x256xf32> to vector<144x256xf32>
    %4 = arith.truncf %3 : vector<144x256xf32> to vector<144x256xbf16>
    %cst = arith.constant dense<0.000000e+00> : vector<16x256xf32>
    %5 = tpu.matmul %1, %4, %cst {dimension_numbers = #tpu.dot_dimension_numbers<[1], [0], [0], [1], [0, 0, 1, 1], [], []>} : vector<16x144xbf16>, vector<144x256xbf16>, vector<16x256xf32> -> vector<16x256xf32>
    %c0_4 = arith.constant 0 : index
    %c0_5 = arith.constant 0 : index
    %6 = vector.load %arg3[%c0_4, %c0_5] : memref<16x1xf32, #tpu.memory_space<vmem>>, vector<16x1xf32>
    %7 = vector.broadcast %6 : vector<16x1xf32> to vector<16x256xf32>
    %8 = arith.mulf %5, %7 : vector<16x256xf32>
    %c0_6 = arith.constant 0 : index
    %c0_7 = arith.constant 0 : index
    %9 = vector.load %arg4[%c0_6, %c0_7] : memref<16x1xf32, #tpu.memory_space<vmem>>, vector<16x1xf32>
    %10 = vector.broadcast %9 : vector<16x1xf32> to vector<16x256xf32>
    %11 = arith.addf %8, %10 : vector<16x256xf32>
    %cst_8 = arith.constant 0.000000e+00 : f32
    %12 = vector.broadcast %cst_8 : f32 to vector<16x256xf32>
    %13 = arith.maximumf %11, %12 : vector<16x256xf32>
    %c0_9 = arith.constant 0 : index
    %c0_10 = arith.constant 0 : index
    %c0_11 = arith.constant 0 : index
    %14 = vector.load %arg5[%c0_9, %c0_10, %c0_11] : memref<1x16x256xf32, #tpu.memory_space<vmem>>, vector<1x16x256xf32>
    %15 = vector.shape_cast %14 : vector<1x16x256xf32> to vector<16x256xf32>
    %16 = vector.shape_cast %13 : vector<16x256xf32> to vector<1x16x256xf32>
    tpu.vector_store %arg5[%c0_9, %c0_10, %c0_11], %16 {strides = array<i32>} : memref<1x16x256xf32, #tpu.memory_space<vmem>>, vector<1x16x256xf32>,
    return
  }
  func.func @transform_0(%arg0: i32) -> (i32, i32, i32) {
    %c0_i32 = arith.constant 0 : i32
    %c0_i32_0 = arith.constant 0 : i32
    %c0_i32_1 = arith.constant 0 : i32
    return %arg0, %c0_i32, %c0_i32_0 : i32, i32, i32
  }
  func.func @transform_1(%arg0: i32) -> (i32, i32) {
    %c0_i32 = arith.constant 0 : i32
    %c0_i32_0 = arith.constant 0 : i32
    %c0_i32_1 = arith.constant 0 : i32
    return %c0_i32, %c0_i32_0 : i32, i32
  }
  func.func @transform_2(%arg0: i32) -> (i32, i32) {
    %c0_i32 = arith.constant 0 : i32
    %c0_i32_0 = arith.constant 0 : i32
    %c0_i32_1 = arith.constant 0 : i32
    return %c0_i32, %c0_i32_0 : i32, i32
  }
  func.func @transform_3(%arg0: i32) -> (i32, i32) {
    %c0_i32 = arith.constant 0 : i32
    %c0_i32_0 = arith.constant 0 : i32
    %c0_i32_1 = arith.constant 0 : i32
    return %c0_i32, %c0_i32_0 : i32, i32
  }
  func.func @transform_4(%arg0: i32) -> (i32, i32, i32) {
    %c0_i32 = arith.constant 0 : i32
    %c0_i32_0 = arith.constant 0 : i32
    %c0_i32_1 = arith.constant 0 : i32
    return %arg0, %c0_i32, %c0_i32_0 : i32, i32, i32
  }
}

module attributes {stable_mosaic.version = 11 : i64} {
  func.func @_conv_bn_add_relu_kernel(%arg0: i32, %arg1: memref<1x144x256xf32, #tpu.memory_space<vmem>>, %arg2: memref<16x144xf32, #tpu.memory_space<vmem>>, %arg3: memref<16x1xf32, #tpu.memory_space<vmem>>, %arg4: memref<16x1xf32, #tpu.memory_space<vmem>>, %arg5: memref<1x16x256xf32, #tpu.memory_space<vmem>>, %arg6: memref<1x16x256xf32, #tpu.memory_space<vmem>>) attributes {dimension_semantics = [#tpu.dimension_semantics<parallel>], iteration_bounds = array<i64: 2>, scalar_prefetch = 0 : i64, scratch_operands = 0 : i64, tpu.core_type = #tpu.core_type<tc>, window_params = [{transform_indices = @transform_0, window_bounds = array<i64: 1, 144, 256>}, {pipeline_mode = #tpu.pipeline_mode<synchronous>, transform_indices = @transform_1, window_bounds = array<i64: 16, 144>}, {pipeline_mode = #tpu.pipeline_mode<synchronous>, transform_indices = @transform_2, window_bounds = array<i64: 16, 1>}, {pipeline_mode = #tpu.pipeline_mode<synchronous>, transform_indices = @transform_3, window_bounds = array<i64: 16, 1>}, {transform_indices = @transform_4, window_bounds = array<i64: 1, 16, 256>}, {transform_indices = @transform_5, window_bounds = array<i64: 1, 16, 256>}]} {
    %c0 = arith.constant 0 : index
    %c0_0 = arith.constant 0 : index
    %0 = vector.load %arg2[%c0, %c0_0] : memref<16x144xf32, #tpu.memory_space<vmem>>, vector<16x144xf32>
    %1 = arith.truncf %0 : vector<16x144xf32> to vector<16x144xbf16>
    %c0_1 = arith.constant 0 : index
    %c0_2 = arith.constant 0 : index
    %c0_3 = arith.constant 0 : index
    %2 = vector.load %arg1[%c0_1, %c0_2, %c0_3] : memref<1x144x256xf32, #tpu.memory_space<vmem>>, vector<1x144x256xf32>
    %3 = vector.shape_cast %2 : vector<1x144x256xf32> to vector<144x256xf32>
    %4 = arith.truncf %3 : vector<144x256xf32> to vector<144x256xbf16>
    %cst = arith.constant dense<0.000000e+00> : vector<16x256xf32>
    %5 = tpu.matmul %1, %4, %cst {dimension_numbers = #tpu.dot_dimension_numbers<[1], [0], [0], [1], [0, 0, 1, 1], [], []>} : vector<16x144xbf16>, vector<144x256xbf16>, vector<16x256xf32> -> vector<16x256xf32>
    %c0_4 = arith.constant 0 : index
    %c0_5 = arith.constant 0 : index
    %6 = vector.load %arg3[%c0_4, %c0_5] : memref<16x1xf32, #tpu.memory_space<vmem>>, vector<16x1xf32>
    %7 = vector.broadcast %6 : vector<16x1xf32> to vector<16x256xf32>
    %8 = arith.mulf %5, %7 : vector<16x256xf32>
    %c0_6 = arith.constant 0 : index
    %c0_7 = arith.constant 0 : index
    %9 = vector.load %arg4[%c0_6, %c0_7] : memref<16x1xf32, #tpu.memory_space<vmem>>, vector<16x1xf32>
    %10 = vector.broadcast %9 : vector<16x1xf32> to vector<16x256xf32>
    %11 = arith.addf %8, %10 : vector<16x256xf32>
    %c0_8 = arith.constant 0 : index
    %c0_9 = arith.constant 0 : index
    %c0_10 = arith.constant 0 : index
    %12 = vector.load %arg5[%c0_8, %c0_9, %c0_10] : memref<1x16x256xf32, #tpu.memory_space<vmem>>, vector<1x16x256xf32>
    %13 = vector.shape_cast %12 : vector<1x16x256xf32> to vector<16x256xf32>
    %14 = arith.addf %11, %13 : vector<16x256xf32>
    %cst_11 = arith.constant 0.000000e+00 : f32
    %15 = vector.broadcast %cst_11 : f32 to vector<16x256xf32>
    %16 = arith.maximumf %14, %15 : vector<16x256xf32>
    %c0_12 = arith.constant 0 : index
    %c0_13 = arith.constant 0 : index
    %c0_14 = arith.constant 0 : index
    %17 = vector.load %arg6[%c0_12, %c0_13, %c0_14] : memref<1x16x256xf32, #tpu.memory_space<vmem>>, vector<1x16x256xf32>
    %18 = vector.shape_cast %17 : vector<1x16x256xf32> to vector<16x256xf32>
    %19 = vector.shape_cast %16 : vector<16x256xf32> to vector<1x16x256xf32>
    tpu.vector_store %arg6[%c0_12, %c0_13, %c0_14], %19 {strides = array<i32>} : memref<1x16x256xf32, #tpu.memory_space<vmem>>, vector<1x16x256xf32>,
    return
  }
  func.func @transform_0(%arg0: i32) -> (i32, i32, i32) {
    %c0_i32 = arith.constant 0 : i32
    %c0_i32_0 = arith.constant 0 : i32
    %c0_i32_1 = arith.constant 0 : i32
    return %arg0, %c0_i32, %c0_i32_0 : i32, i32, i32
  }
  func.func @transform_1(%arg0: i32) -> (i32, i32) {
    %c0_i32 = arith.constant 0 : i32
    %c0_i32_0 = arith.constant 0 : i32
    %c0_i32_1 = arith.constant 0 : i32
    return %c0_i32, %c0_i32_0 : i32, i32
  }
  func.func @transform_2(%arg0: i32) -> (i32, i32) {
    %c0_i32 = arith.constant 0 : i32
    %c0_i32_0 = arith.constant 0 : i32
    %c0_i32_1 = arith.constant 0 : i32
    return %c0_i32, %c0_i32_0 : i32, i32
  }
  func.func @transform_3(%arg0: i32) -> (i32, i32) {
    %c0_i32 = arith.constant 0 : i32
    %c0_i32_0 = arith.constant 0 : i32
    %c0_i32_1 = arith.constant 0 : i32
    return %c0_i32, %c0_i32_0 : i32, i32
  }
  func.func @transform_4(%arg0: i32) -> (i32, i32, i32) {
    %c0_i32 = arith.constant 0 : i32
    %c0_i32_0 = arith.constant 0 : i32
    %c0_i32_1 = arith.constant 0 : i32
    return %arg0, %c0_i32, %c0_i32_0 : i32, i32, i32
  }
  func.func @transform_5(%arg0: i32) -> (i32, i32, i32) {
    %c0_i32 = arith.constant 0 : i32
    %c0_i32_0 = arith.constant 0 : i32
    %c0_i32_1 = arith.constant 0 : i32
    return %arg0, %c0_i32, %c0_i32_0 : i32, i32, i32
  }
}

</mosaic_0001>

<bundles_post_ra>
// kernel: resnet_block_forward.2
= control target key start
LH: loop header
LB: loop body
LE: loop exit
PB: predicated region body
PF: predicated region fallthrough
CT: control target
= control target key end

     0   :  { %s459_s15 = smov 0   ;;  %s542_s0 = inlined_call_operand.vmem [shape: f32[2,144,256], index: 0, kind: input, shape index: {}]   ;;  %s543_s1 = inlined_call_operand.vmem [shape: f32[16,144], index: 1, kind: input, shape index: {}]   ;;  %s544_s2 = inlined_call_operand.vmem [shape: f32[16,1], index: 2, kind: input, shape index: {}]   ;;  %s545_s3 = inlined_call_operand.vmem [shape: f32[16,1], index: 3, kind: input, shape index: {}]   ;;  %s546_s4 = inlined_call_operand.vmem [shape: f32[2,16,256], index: 4, kind: output, shape index: {}]  }
   0x1 LB: > { %s401_s16 = sadd.s32 4294967295, %s431_s15   ;;  %p405_p0 = scmp.ge.s32.totalorder %s431_s15, 1  ;;  %s431_s15 = sphi %s459_s15, %s14_s15  }
   0x2   : > { %p162_p1 = scmp.lt.s32.totalorder %s431_s15, 3 }
   0x4   : > { %p163_p2 = pnand %p405_p0, %p162_p1 }
   0x5   : > { %p188_p3 = scmp.lt.s32.totalorder (!%p163_p2), %s401_s16, 1 }
   0x6   : > { %166 = sbr.rel (%p163_p2) target bundleno = 260 (0x104), region = 36 }
   0xb   : > { %v200_v0 = vld [vmem:[%s543_s1 + $0x8] sm:$0xff]  ;;  %v202_v1 = vld [vmem:[%s543_s1 + $0x18] sm:$0xff]  ;;  %vm259_vm0 = vcmask 130048   ;;  %v433_v3 = vmov 0   ;;  %v306_v4 = vld [vmem:[%s544_s2] sm:$0xff]  ;;  %s548_s16 = smov (!%p188_p3, %s401_s16), 1 }
   0xc   : > { %v204_v2 = vpack.c.bf16 %v202_v1, %v200_v0  ;;  %423 = vset.pattern.permute.xlu0 %v433_v3  ;;  %424 = vset.pattern.permute.xlu1 %v433_v3  ;;  %v322_v5 = vld [vmem:[%s545_s3] sm:$0xff]  ;;  %v307_v6 = vld [vmem:[%s544_s2 + $0x8] sm:$0xff]  ;;  %s413_s29 = smul.u32 288, %s548_s16  ;;  %v201_v63 = vld [vmem:[%s543_s1 + $0x10] sm:$0xff]  ;;  %s412_s11 = sshll.u32 %s548_s16, 5 }
   0xd   : > { %310 = vperm.xlu0 %423, %v306_v4   ;;  %326 = vperm.xlu1 %424, %v322_v5   ;;  %v323_v7 = vld [vmem:[%s545_s3 + $0x8] sm:$0xff]  ;;  %v199_v62 = vld [vmem:[%s543_s1] sm:$0xff]  ;;  %s197_s14 = scalar_lea.vmem %s546_s4, %s412_s11 }
   0xe   : > { %409 = vmatprep.mubr.msk.bf16.mxu0 %vm259_vm0, %v204_v2  ;;  %s491_s6 = scalar_lea.vmem %s542_s0, %s413_s29  ;;  %v203_v0 = vpack.c.bf16 %v201_v63, %v199_v62 }
   0xf   : > { %v234_v8 = vld [vmem:[%s491_s6 + $0xe8] sm:$0xff]  ;;  %v236_v9 = vld [vmem:[%s491_s6 + $0xf8] sm:$0xff]  ;;  %v233_v10 = vld [vmem:[%s491_s6 + $0xe0] sm:$0xff] }
  0x10   : > { %v256_v11 = vpack.c.bf16 %v236_v9, %v234_v8  ;;  %v235_v12 = vld [vmem:[%s491_s6 + $0xf0] sm:$0xff]  ;;  %v230_v13 = vld [vmem:[%s491_s6 + $0xc8] sm:$0xff]  ;;  %v232_v14 = vld [vmem:[%s491_s6 + $0xd8] sm:$0xff] }
  0x11   : > { %315 = vperm.xlu0 %423, %v307_v6   ;;  %331 = vperm.xlu1 %424, %v323_v7   ;;  %v255_v15 = vpack.c.bf16 %v235_v12, %v233_v10  ;;  %v254_v16 = vpack.c.bf16 %v232_v14, %v230_v13  ;;  %v229_v17 = vld [vmem:[%s491_s6 + $0xc0] sm:$0xff]  ;;  %v231_v18 = vld [vmem:[%s491_s6 + $0xd0] sm:$0xff]  ;;  %v226_v19 = vld [vmem:[%s491_s6 + $0xa8] sm:$0xff] }
  0x12   : > { %263 = vmatprep.subr.bf16.mxu0 %v256_v11  ;;  %v228_v20 = vld [vmem:[%s491_s6 + $0xb8] sm:$0xff]  ;;  %v253_v21 = vpack.c.bf16 %v231_v18, %v229_v17  ;;  %v225_v23 = vld [vmem:[%s491_s6 + $0xa0] sm:$0xff]  ;;  %v227_v24 = vld [vmem:[%s491_s6 + $0xb0] sm:$0xff] }
  0x13   : > { %264 = vmatpush1.bf16.msra.mxu0 %v255_v15  ;;  %v252_v22 = vpack.c.bf16 %v228_v20, %v226_v19  ;;  %v222_v25 = vld [vmem:[%s491_s6 + $0x88] sm:$0xff]  ;;  %v224_v26 = vld [vmem:[%s491_s6 + $0x98] sm:$0xff]  ;;  %v251_v27 = vpack.c.bf16 %v227_v24, %v225_v23  ;;  %v221_v29 = vld [vmem:[%s491_s6 + $0x80] sm:$0xff] }
  0x14   : > { %265 = vmatprep.subr.bf16.mxu0 %v254_v16  ;;  %v250_v28 = vpack.c.bf16 %v224_v26, %v222_v25  ;;  %v223_v30 = vld [vmem:[%s491_s6 + $0x90] sm:$0xff]  ;;  %v218_v31 = vld [vmem:[%s491_s6 + $0x68] sm:$0xff]  ;;  %v220_v32 = vld [vmem:[%s491_s6 + $0x78] sm:$0xff] }
  0x15   : > { %v249_v33 = vpack.c.bf16 %v223_v30, %v221_v29  ;;  %v248_v34 = vpack.c.bf16 %v220_v32, %v218_v31  ;;  %v217_v35 = vld [vmem:[%s491_s6 + $0x60] sm:$0xff]  ;;  %v219_v36 = vld [vmem:[%s491_s6 + $0x70] sm:$0xff]  ;;  %v214_v37 = vld [vmem:[%s491_s6 + $0x48] sm:$0xff] }
  0x16   : > { %v216_v38 = vld [vmem:[%s491_s6 + $0x58] sm:$0xff]  ;;  %v247_v39 = vpack.c.bf16 %v219_v36, %v217_v35  ;;  %v213_v41 = vld [vmem:[%s491_s6 + $0x40] sm:$0xff]  ;;  %v215_v42 = vld [vmem:[%s491_s6 + $0x50] sm:$0xff] }
  0x17   : > { %266 = vmatpush1.bf16.msra.mxu0 %v253_v21  ;;  %v246_v40 = vpack.c.bf16 %v216_v38, %v214_v37  ;;  %v210_v43 = vld [vmem:[%s491_s6 + $0x28] sm:$0xff]  ;;  %v212_v44 = vld [vmem:[%s491_s6 + $0x38] sm:$0xff]  ;;  %v245_v45 = vpack.c.bf16 %v215_v42, %v213_v41  ;;  %v209_v47 = vld [vmem:[%s491_s6 + $0x20] sm:$0xff] }
  0x18   : > { %267 = vmatprep.subr.bf16.mxu0 %v252_v22  ;;  %v244_v46 = vpack.c.bf16 %v212_v44, %v210_v43  ;;  %v211_v48 = vld [vmem:[%s491_s6 + $0x30] sm:$0xff]  ;;  %v206_v49 = vld [vmem:[%s491_s6 + $0x8] sm:$0xff]  ;;  %v208_v50 = vld [vmem:[%s491_s6 + $0x18] sm:$0xff] }
  0x19   : > { %v243_v51 = vpack.c.bf16 %v211_v48, %v209_v47  ;;  %v242_v52 = vpack.c.bf16 %v208_v50, %v206_v49  ;;  %v205_v53 = vld [vmem:[%s491_s6] sm:$0xff]  ;;  %v207_v54 = vld [vmem:[%s491_s6 + $0x10] sm:$0xff]  ;;  %v238_v55 = vld [vmem:[%s491_s6 + $0x108] sm:$0xff] }
  0x1a   : > { %v240_v56 = vld [vmem:[%s491_s6 + $0x118] sm:$0xff]  ;;  %v241_v57 = vpack.c.bf16 %v207_v54, %v205_v53  ;;  %v237_v59 = vld [vmem:[%s491_s6 + $0x100] sm:$0xff]  ;;  %v239_v60 = vld [vmem:[%s491_s6 + $0x110] sm:$0xff] }
  0x1b   : > { %268 = vmatpush1.bf16.msra.mxu0 %v251_v27  ;;  %v258_v58 = vpack.c.bf16 %v240_v56, %v238_v55  ;;  %v257_v61 = vpack.c.bf16 %v239_v60, %v237_v59 }
  0x1c   : > { %269 = vmatprep.subr.bf16.mxu0 %v250_v28 }
  0x1f   : > { %270 = vmatpush1.bf16.msra.mxu0 %v249_v33 }
  0x20   : > { %271 = vmatprep.subr.bf16.mxu0 %v248_v34 }
  0x23   : > { %272 = vmatpush1.bf16.msra.mxu0 %v247_v39 }
  0x24   : > { %273 = vmatprep.subr.bf16.mxu0 %v246_v40 }
  0x27   : > { %274 = vmatpush1.bf16.msra.mxu0 %v245_v45 }
  0x28   : > { %275 = vmatprep.subr.bf16.mxu0 %v244_v46 }
  0x2b   : > { %276 = vmatpush1.bf16.msra.mxu0 %v243_v51 }
  0x2c   : > { %277 = vmatprep.subr.bf16.mxu0 %v242_v52 }
  0x2f   : > { %278 = vmatpush1.bf16.msra.mxu0 %v241_v57 }
  0x30   : > { %293 = vmatprep.subr.bf16.mxu0 %v258_v58 }
  0x33   : > { %294 = vmatpush2.bf16.msra.mxu0 %v257_v61 }
  0x36   : > { %296 = vmatmul.mubr.bf16.vlgmr.msra.gmra.mxu0 %v203_v0 }
  0x88   : > { %v311_v1 = vpop.permute.xlu0 %310  ;;  %v327_v2 = vpop.permute.xlu1 %326 }
  0x8c   : > { %v316_v8 = vpop.permute.xlu0 %315  ;;  %v332_v13 = vpop.permute.xlu1 %331 }
  0xf6   : > { %v297_v3 = vpop.f32.mrf.mxu0 }
  0xf7   : > { %v318_v4 = vmul.f32 %v311_v1, %v297_v3 }
  0xf8   : > { %v299_v5 = vpop.f32.mrf.mxu0 }
  0xf9   : > { %v334_v6 = vadd.f32 %v327_v2, %v318_v4  ;;  %v319_v7 = vmul.f32 %v311_v1, %v299_v5 }
  0xfa   : > { %v301_v9 = vpop.f32.mrf.mxu0 }
  0xfb   : > { %v338_v10 = vmax.f32 %v334_v6, 0.0  ;;  %v335_v11 = vadd.f32 %v327_v2, %v319_v7  ;;  %v320_v12 = vmul.f32 %v316_v8, %v301_v9 }
  0xfc   : > { %v303_v14 = vpop.f32.mrf.mxu0 }
  0xfd   : > { %342 = vst [vmem:[%s197_s14] sm:$0xff] %v338_v10  ;;  %v339_v15 = vmax.f32 %v335_v11, 0.0  ;;  %v336_v16 = vadd.f32 %v332_v13, %v320_v12  ;;  %v321_v17 = vmul.f32 %v316_v8, %v303_v14 }
  0xff   : > { %343 = vst [vmem:[%s197_s14 + $0x8] sm:$0xff] %v339_v15  ;;  %v340_v18 = vmax.f32 %v336_v16, 0.0  ;;  %v337_v19 = vadd.f32 %v332_v13, %v321_v17 }
 0x101   : > { %344 = vst [vmem:[%s197_s14 + $0x10] sm:$0xff] %v340_v18  ;;  %v341_v20 = vmax.f32 %v337_v19, 0.0 }
 0x103   : > { %345 = vst [vmem:[%s197_s14 + $0x18] sm:$0xff] %v341_v20 }
 0x104 PF: > { %s14_s15 = sadd.s32 1, %s431_s15  }
 0x105   : > { %p11_p4 = scmp.ge.s32.totalorder %s14_s15, 4  }
 0x107   :  { %13 = sbr.rel (!%p11_p4) target bundleno = 1 (0x1), region = 66 }

// kernel: resnet_block_forward.3
= control target key start
LH: loop header
LB: loop body
LE: loop exit
PB: predicated region body
PF: predicated region fallthrough
CT: control target
= control target key end

     0   :  { %s534_s18 = smov 0   ;;  %s620_s0 = inlined_call_operand.vmem [shape: f32[2,144,256], index: 0, kind: input, shape index: {}]   ;;  %s621_s1 = inlined_call_operand.vmem [shape: f32[16,144], index: 1, kind: input, shape index: {}]   ;;  %s622_s2 = inlined_call_operand.vmem [shape: f32[16,1], index: 2, kind: input, shape index: {}]   ;;  %s623_s3 = inlined_call_operand.vmem [shape: f32[16,1], index: 3, kind: input, shape index: {}]   ;;  %s624_s4 = inlined_call_operand.vmem [shape: f32[2,16,256], index: 4, kind: input, shape index: {}]   ;;  %s625_s5 = inlined_call_operand.vmem [shape: f32[2,16,256], index: 5, kind: output, shape index: {}]  }
   0x1 LB: > { %s468_s19 = sadd.s32 4294967295, %s501_s18   ;;  %p472_p0 = scmp.ge.s32.totalorder %s501_s18, 1  ;;  %s501_s18 = sphi %s534_s18, %s15_s18  }
   0x2   : > { %p197_p1 = scmp.lt.s32.totalorder %s501_s18, 3 }
   0x4   : > { %p198_p2 = pnand %p472_p0, %p197_p1 }
   0x5   : > { %p230_p3 = scmp.lt.s32.totalorder (!%p198_p2), %s468_s19, 1 }
   0x6   : > { %201 = sbr.rel (%p198_p2) target bundleno = 262 (0x106), region = 40 }
   0xb   : > { %v247_v0 = vld [vmem:[%s621_s1 + $0x8] sm:$0xff]  ;;  %v249_v1 = vld [vmem:[%s621_s1 + $0x18] sm:$0xff]  ;;  %vm306_vm0 = vcmask 130048   ;;  %v503_v3 = vmov 0   ;;  %v353_v4 = vld [vmem:[%s622_s2] sm:$0xff]  ;;  %s627_s19 = smov (!%p230_p3, %s468_s19), 1 }
   0xc   : > { %v251_v2 = vpack.c.bf16 %v249_v1, %v247_v0  ;;  %493 = vset.pattern.permute.xlu0 %v503_v3  ;;  %494 = vset.pattern.permute.xlu1 %v503_v3  ;;  %v369_v5 = vld [vmem:[%s623_s3] sm:$0xff]  ;;  %v354_v6 = vld [vmem:[%s622_s2 + $0x8] sm:$0xff]  ;;  %s483_s7 = smul.u32 288, %s627_s19  ;;  %v248_v63 = vld [vmem:[%s621_s1 + $0x10] sm:$0xff]  ;;  %s481_s15 = sshll.u32 %s627_s19, 5 }
   0xd   : > { %357 = vperm.xlu0 %493, %v353_v4   ;;  %373 = vperm.xlu1 %494, %v369_v5   ;;  %v370_v7 = vld [vmem:[%s623_s3 + $0x8] sm:$0xff]  ;;  %v246_v62 = vld [vmem:[%s621_s1] sm:$0xff]  ;;  %s239_s20 = scalar_lea.vmem %s624_s4, %s481_s15  ;;  %s244_s22 = scalar_lea.vmem %s625_s5, %s481_s15 }
   0xe   : > { %478 = vmatprep.mubr.msk.bf16.mxu0 %vm306_vm0, %v251_v2  ;;  %s566_s10 = scalar_lea.vmem %s620_s0, %s483_s7  ;;  %v250_v0 = vpack.c.bf16 %v248_v63, %v246_v62  ;;  %v385_v5 = vld [vmem:[%s239_s20] sm:$0xff] }
   0xf   : > { %v281_v8 = vld [vmem:[%s566_s10 + $0xe8] sm:$0xff]  ;;  %v283_v9 = vld [vmem:[%s566_s10 + $0xf8] sm:$0xff]  ;;  %v280_v10 = vld [vmem:[%s566_s10 + $0xe0] sm:$0xff] }
  0x10   : > { %v303_v11 = vpack.c.bf16 %v283_v9, %v281_v8  ;;  %v282_v12 = vld [vmem:[%s566_s10 + $0xf0] sm:$0xff]  ;;  %v277_v13 = vld [vmem:[%s566_s10 + $0xc8] sm:$0xff]  ;;  %v279_v14 = vld [vmem:[%s566_s10 + $0xd8] sm:$0xff] }
  0x11   : > { %362 = vperm.xlu0 %493, %v354_v6   ;;  %378 = vperm.xlu1 %494, %v370_v7   ;;  %v302_v15 = vpack.c.bf16 %v282_v12, %v280_v10  ;;  %v301_v16 = vpack.c.bf16 %v279_v14, %v277_v13  ;;  %v276_v17 = vld [vmem:[%s566_s10 + $0xc0] sm:$0xff]  ;;  %v278_v18 = vld [vmem:[%s566_s10 + $0xd0] sm:$0xff]  ;;  %v273_v19 = vld [vmem:[%s566_s10 + $0xa8] sm:$0xff] }
  0x12   : > { %310 = vmatprep.subr.bf16.mxu0 %v303_v11  ;;  %v275_v20 = vld [vmem:[%s566_s10 + $0xb8] sm:$0xff]  ;;  %v300_v21 = vpack.c.bf16 %v278_v18, %v276_v17  ;;  %v272_v23 = vld [vmem:[%s566_s10 + $0xa0] sm:$0xff]  ;;  %v274_v24 = vld [vmem:[%s566_s10 + $0xb0] sm:$0xff] }
  0x13   : > { %311 = vmatpush1.bf16.msra.mxu0 %v302_v15  ;;  %v299_v22 = vpack.c.bf16 %v275_v20, %v273_v19  ;;  %v269_v25 = vld [vmem:[%s566_s10 + $0x88] sm:$0xff]  ;;  %v271_v26 = vld [vmem:[%s566_s10 + $0x98] sm:$0xff]  ;;  %v298_v27 = vpack.c.bf16 %v274_v24, %v272_v23  ;;  %v268_v29 = vld [vmem:[%s566_s10 + $0x80] sm:$0xff] }
  0x14   : > { %312 = vmatprep.subr.bf16.mxu0 %v301_v16  ;;  %v297_v28 = vpack.c.bf16 %v271_v26, %v269_v25  ;;  %v270_v30 = vld [vmem:[%s566_s10 + $0x90] sm:$0xff]  ;;  %v265_v31 = vld [vmem:[%s566_s10 + $0x68] sm:$0xff]  ;;  %v267_v32 = vld [vmem:[%s566_s10 + $0x78] sm:$0xff] }
  0x15   : > { %v296_v33 = vpack.c.bf16 %v270_v30, %v268_v29  ;;  %v295_v34 = vpack.c.bf16 %v267_v32, %v265_v31  ;;  %v264_v35 = vld [vmem:[%s566_s10 + $0x60] sm:$0xff]  ;;  %v266_v36 = vld [vmem:[%s566_s10 + $0x70] sm:$0xff]  ;;  %v261_v37 = vld [vmem:[%s566_s10 + $0x48] sm:$0xff] }
  0x16   : > { %v263_v38 = vld [vmem:[%s566_s10 + $0x58] sm:$0xff]  ;;  %v294_v39 = vpack.c.bf16 %v266_v36, %v264_v35  ;;  %v260_v41 = vld [vmem:[%s566_s10 + $0x40] sm:$0xff]  ;;  %v262_v42 = vld [vmem:[%s566_s10 + $0x50] sm:$0xff] }
  0x17   : > { %313 = vmatpush1.bf16.msra.mxu0 %v300_v21  ;;  %v293_v40 = vpack.c.bf16 %v263_v38, %v261_v37  ;;  %v257_v43 = vld [vmem:[%s566_s10 + $0x28] sm:$0xff]  ;;  %v259_v44 = vld [vmem:[%s566_s10 + $0x38] sm:$0xff]  ;;  %v292_v45 = vpack.c.bf16 %v262_v42, %v260_v41  ;;  %v256_v47 = vld [vmem:[%s566_s10 + $0x20] sm:$0xff] }
  0x18   : > { %314 = vmatprep.subr.bf16.mxu0 %v299_v22  ;;  %v291_v46 = vpack.c.bf16 %v259_v44, %v257_v43  ;;  %v258_v48 = vld [vmem:[%s566_s10 + $0x30] sm:$0xff]  ;;  %v253_v49 = vld [vmem:[%s566_s10 + $0x8] sm:$0xff]  ;;  %v255_v50 = vld [vmem:[%s566_s10 + $0x18] sm:$0xff] }
  0x19   : > { %v290_v51 = vpack.c.bf16 %v258_v48, %v256_v47  ;;  %v289_v52 = vpack.c.bf16 %v255_v50, %v253_v49  ;;  %v252_v53 = vld [vmem:[%s566_s10] sm:$0xff]  ;;  %v254_v54 = vld [vmem:[%s566_s10 + $0x10] sm:$0xff]  ;;  %v285_v55 = vld [vmem:[%s566_s10 + $0x108] sm:$0xff] }
  0x1a   : > { %v287_v56 = vld [vmem:[%s566_s10 + $0x118] sm:$0xff]  ;;  %v288_v57 = vpack.c.bf16 %v254_v54, %v252_v53  ;;  %v284_v59 = vld [vmem:[%s566_s10 + $0x100] sm:$0xff]  ;;  %v286_v60 = vld [vmem:[%s566_s10 + $0x110] sm:$0xff] }
  0x1b   : > { %315 = vmatpush1.bf16.msra.mxu0 %v298_v27  ;;  %v305_v58 = vpack.c.bf16 %v287_v56, %v285_v55  ;;  %v304_v61 = vpack.c.bf16 %v286_v60, %v284_v59  ;;  %v386_v10 = vld [vmem:[%s239_s20 + $0x8] sm:$0xff]  ;;  %v387_v16 = vld [vmem:[%s239_s20 + $0x10] sm:$0xff]  ;;  %v388_v22 = vld [vmem:[%s239_s20 + $0x18] sm:$0xff] }
  0x1c   : > { %316 = vmatprep.subr.bf16.mxu0 %v297_v28 }
  0x1f   : > { %317 = vmatpush1.bf16.msra.mxu0 %v296_v33 }
  0x20   : > { %318 = vmatprep.subr.bf16.mxu0 %v295_v34 }
  0x23   : > { %319 = vmatpush1.bf16.msra.mxu0 %v294_v39 }
  0x24   : > { %320 = vmatprep.subr.bf16.mxu0 %v293_v40 }
  0x27   : > { %321 = vmatpush1.bf16.msra.mxu0 %v292_v45 }
  0x28   : > { %322 = vmatprep.subr.bf16.mxu0 %v291_v46 }
  0x2b   : > { %323 = vmatpush1.bf16.msra.mxu0 %v290_v51 }
  0x2c   : > { %324 = vmatprep.subr.bf16.mxu0 %v289_v52 }
  0x2f   : > { %325 = vmatpush1.bf16.msra.mxu0 %v288_v57 }
  0x30   : > { %340 = vmatprep.subr.bf16.mxu0 %v305_v58 }
  0x33   : > { %341 = vmatpush2.bf16.msra.mxu0 %v304_v61 }
  0x36   : > { %343 = vmatmul.mubr.bf16.vlgmr.msra.gmra.mxu0 %v250_v0 }
  0x88   : > { %v358_v1 = vpop.permute.xlu0 %357  ;;  %v374_v2 = vpop.permute.xlu1 %373 }
  0x8c   : > { %v363_v9 = vpop.permute.xlu0 %362  ;;  %v379_v15 = vpop.permute.xlu1 %378 }
  0xf6   : > { %v344_v3 = vpop.f32.mrf.mxu0 }
  0xf7   : > { %v365_v4 = vmul.f32 %v358_v1, %v344_v3 }
  0xf8   : > { %v346_v6 = vpop.f32.mrf.mxu0 }
  0xf9   : > { %v381_v7 = vadd.f32 %v374_v2, %v365_v4  ;;  %v366_v8 = vmul.f32 %v358_v1, %v346_v6 }
  0xfa   : > { %v348_v11 = vpop.f32.mrf.mxu0 }
  0xfb   : > { %v389_v12 = vadd.f32 %v385_v5, %v381_v7  ;;  %v382_v13 = vadd.f32 %v374_v2, %v366_v8  ;;  %v367_v14 = vmul.f32 %v363_v9, %v348_v11 }
  0xfc   : > { %v350_v17 = vpop.f32.mrf.mxu0 }
  0xfd   : > { %v393_v18 = vmax.f32 %v389_v12, 0.0  ;;  %v390_v19 = vadd.f32 %v386_v10, %v382_v13  ;;  %v383_v20 = vadd.f32 %v379_v15, %v367_v14  ;;  %v368_v21 = vmul.f32 %v363_v9, %v350_v17 }
  0xff   : > { %397 = vst [vmem:[%s244_s22] sm:$0xff] %v393_v18  ;;  %v394_v23 = vmax.f32 %v390_v19, 0.0  ;;  %v391_v24 = vadd.f32 %v387_v16, %v383_v20  ;;  %v384_v25 = vadd.f32 %v379_v15, %v368_v21 }
 0x101   : > { %398 = vst [vmem:[%s244_s22 + $0x8] sm:$0xff] %v394_v23  ;;  %v395_v26 = vmax.f32 %v391_v24, 0.0  ;;  %v392_v27 = vadd.f32 %v388_v22, %v384_v25 }
 0x103   : > { %399 = vst [vmem:[%s244_s22 + $0x10] sm:$0xff] %v395_v26  ;;  %v396_v28 = vmax.f32 %v392_v27, 0.0 }
 0x105   : > { %400 = vst [vmem:[%s244_s22 + $0x18] sm:$0xff] %v396_v28 }
 0x106 PF: > { %s15_s18 = sadd.s32 1, %s501_s18  }
 0x107   : > { %p12_p4 = scmp.ge.s32.totalorder %s15_s18, 4  }
 0x109   :  { %14 = sbr.rel (!%p12_p4) target bundleno = 1 (0x1), region = 73 }

</bundles_post_ra>
